<compile_context>
chip_gen: v7x
topology: tpu7x:2x2x1
jax: 0.10.0
libtpu: 0.0.40
codegen_flags: <defaults>
</compile_context>

<pallas_src>
import functools
import math

import jax
import jax.numpy as jnp
from jax.experimental import pallas as pl
from jax.experimental.pallas import tpu as pltpu


def _sublane_req(dtype):
    """Sublane rows needed for a dense (r,128) VMEM tiling of this dtype."""
    return max(8, 32 // jnp.dtype(dtype).itemsize)   # 8 f32, 16 bf16, 32 int8


def _binarize(x, thresh):
    """(x >= thresh) as bool, matching the PyTorch f32 comparison."""
    if jnp.issubdtype(x.dtype, jnp.floating):
        return x.astype(jnp.float32) >= jnp.float32(thresh)
    # Integer (incl. bool-as-uint8) inputs: x >= thresh  <=>  x >= ceil(thresh).
    return x >= jnp.asarray(int(math.ceil(thresh)), x.dtype)


def _dice_kernel(p_ref, t_ref, inter_ref, denom_ref, inter_acc, denom_acc, *,
                 thresh, valid_lanes, tile_l, chunks_per_split, last_chunk,
                 needs_tail_mask):
    split = pl.program_id(0)
    c = pl.program_id(2)
    chunk = split * chunks_per_split + c

    @pl.when(c == 0)
    def _init():
        inter_acc[...] = jnp.zeros_like(inter_acc)
        denom_acc[...] = jnp.zeros_like(denom_acc)

    def _accumulate(mask_tail):
        pb = _binarize(p_ref[...], thresh)        # bool, (1, r, tile_l)
        tb = _binarize(t_ref[...], thresh)
        if mask_tail:
            lane = jax.lax.broadcasted_iota(jnp.int32, pb.shape, dimension=2)
            valid = (chunk * tile_l + lane) < valid_lanes
            pb = jnp.logical_and(pb, valid)
            tb = jnp.logical_and(tb, valid)
        pf = pb.astype(jnp.float32)
        tf = tb.astype(jnp.float32)
        # Fused denominator: sum(p) + sum(t) == sum(p + t).
        inter_acc[...] += jnp.sum(pf * tf)
        denom_acc[...] += jnp.sum(pf + tf)

    if needs_tail_mask:
        # Only the single boundary chunk pays for the iota + mask (VALU work).
        @pl.when(chunk != last_chunk)
        def _interior():
            _accumulate(False)

        @pl.when(chunk == last_chunk)
        def _boundary():
            _accumulate(True)
    else:
        _accumulate(False)

    @pl.when(c == chunks_per_split - 1)
    def _finalize():
        inter_ref[...] = inter_acc[...].reshape(1, 1, 1, 1)
        denom_ref[...] = denom_acc[...].reshape(1, 1, 1, 1)


def _tiling_plan():
    """Per-generation (block element cap, vmem_limit_bytes or None, is_v7x)."""
    try:
        kind = jax.devices()[0].device_kind.lower()
    except Exception:
        kind = ""
    if "v7" in kind or "7x" in kind:
        # 64 MiB physical VMEM per core: ~3 MiB f32-equivalent blocks.
        return 768 * 1024, 44 * 1024 * 1024, True
    if "v6" in kind:
        # 128 MiB physical VMEM: ~4 MiB blocks, generous scoped limit.
        return 1024 * 1024, 96 * 1024 * 1024, False
    if "v5" in kind:
        # v5e: keep ~2 MiB blocks, explicit (safe) scoped limit.
        return 512 * 1024, 48 * 1024 * 1024, False
    # Unknown / older generation: stay under the conservative scoped default.
    return 256 * 1024, None, False


def dice_coeff(predicts, targets, *, smooth=1e-07, thresh=0.5, sample_wise=False):
    """Pallas TPU implementation of DiceCoeff.forward."""
    assert predicts.shape == targets.shape
    # Keep narrow dtypes narrow: only rewrite bool -> uint8 (same byte width).
    # Never upcast int / bf16 inputs to f32 in HBM.
    if predicts.dtype == jnp.bool_:
        predicts = predicts.astype(jnp.uint8)
    if targets.dtype == jnp.bool_:
        targets = targets.astype(jnp.uint8)

    if sample_wise:
        groups = int(predicts.shape[0])
        feat = int(predicts.size) // max(groups, 1)
    else:
        groups = 1
        feat = int(predicts.size)

    p_flat = predicts.reshape(groups, feat)
    t_flat = targets.reshape(groups, feat)

    # Dtype-aware sublane packing: prefer the r that keeps the narrowest input
    # dense; fall back to a coarser r (VMEM padding only, zero extra HBM
    # traffic) when feat is not divisible, and to a bulk+remainder split when
    # feat is not even a multiple of 8.
    needed = max(_sublane_req(p_flat.dtype), _sublane_req(t_flat.dtype))
    r = needed
    while r > 8 and feat % r != 0:
        r //= 2
    if feat % r != 0:
        r = needed
    bulk = (feat // r) * r
    rem = feat - bulk

    if bulk == 0:
        # Degenerate tiny input: do everything in plain JAX.
        pb = _binarize(p_flat, thresh).astype(jnp.float32)
        tb = _binarize(t_flat, thresh).astype(jnp.float32)
        inter = jnp.sum(pb * tb, axis=1)
        denom = jnp.sum(pb, axis=1) + jnp.sum(tb, axis=1)
        dice = 2.0 * inter / (denom + smooth)
        return dice if sample_wise else dice[0]

    cap_elems, vmem_limit, is_v7x = _tiling_plan()

    l = bulk // r
    if rem == 0:
        p3 = p_flat.reshape(groups, r, l)
        t3 = t_flat.reshape(groups, r, l)
    else:
        # One-time slice copy (only hit when feat % 8 != 0); the <r-element
        # per-group tail is folded back in below in plain JAX.
        p3 = p_flat[:, :bulk].reshape(groups, r, l)
        t3 = t_flat[:, :bulk].reshape(groups, r, l)

    # Lane-tile sizing: cap each input block at cap_elems elements.  A single
    # full-extent chunk needs no lane padding and no tail mask at all.
    cap_lanes = max(128, (cap_elems // r) // 128 * 128)
    if l <= cap_lanes:
        tile_l = l
    else:
        tile_l = cap_lanes
    num_chunks = int(pl.cdiv(l, tile_l))

    # v7x: split the reduction axis across the two TensorCores (the wrapper
    # sums the per-split partials).  Only when the chunk count is even so no
    # block index ever goes out of range.
    num_splits = 1
    if is_v7x and num_chunks >= 2:
        if num_chunks % 2 != 0:
            alt_tile = int(pl.cdiv(int(pl.cdiv(l, num_chunks + 1)), 128)) * 128
            if alt_tile >= 128 and int(pl.cdiv(l, alt_tile)) % 2 == 0:
                tile_l = alt_tile
                num_chunks = int(pl.cdiv(l, tile_l))
        if num_chunks % 2 == 0:
            num_splits = 2
    cps = num_chunks // num_splits

    kernel = functools.partial(
        _dice_kernel,
        thresh=float(thresh),
        valid_lanes=int(l),
        tile_l=int(tile_l),
        chunks_per_split=int(cps),
        last_chunk=int(num_chunks - 1),
        needs_tail_mask=(l % tile_l) != 0,
    )

    cost = pl.CostEstimate(
        flops=6 * groups * bulk,
        transcendentals=0,
        bytes_accessed=groups * bulk * (p3.dtype.itemsize + t3.dtype.itemsize)
        + 2 * num_splits * groups * 4,
    )

    in_map = lambda s, g, c, _cps=int(cps): (g, 0, s * _cps + c)
    out_map = lambda s, g, c: (s, g, 0, 0)

    inter_p, denom_p = pl.pallas_call(
        kernel,
        out_shape=(
            jax.ShapeDtypeStruct((num_splits, groups, 1, 1), jnp.float32),
            jax.ShapeDtypeStruct((num_splits, groups, 1, 1), jnp.float32),
        ),
        grid=(num_splits, groups, int(cps)),
        in_specs=[
            pl.BlockSpec((1, r, int(tile_l)), in_map),
            pl.BlockSpec((1, r, int(tile_l)), in_map),
        ],
        out_specs=(
            pl.BlockSpec((1, 1, 1, 1), out_map),
            pl.BlockSpec((1, 1, 1, 1), out_map),
        ),
        scratch_shapes=[
            pltpu.VMEM((1, 1), jnp.float32),   # intersection accumulator
            pltpu.VMEM((1, 1), jnp.float32),   # denominator accumulator
        ],
        compiler_params=pltpu.CompilerParams(
            dimension_semantics=("parallel", "parallel", "arbitrary"),
            vmem_limit_bytes=vmem_limit,
        ),
        cost_estimate=cost,
    )(p3, t3)

    inter = jnp.sum(inter_p, axis=0).reshape(groups)
    denom = jnp.sum(denom_p, axis=0).reshape(groups)

    if rem > 0:
        pr = _binarize(p_flat[:, bulk:], thresh).astype(jnp.float32)
        tr = _binarize(t_flat[:, bulk:], thresh).astype(jnp.float32)
        inter = inter + jnp.sum(pr * tr, axis=1)
        denom = denom + jnp.sum(pr + tr, axis=1)

    dice = 2.0 * inter / (denom + smooth)
    if sample_wise:
        return dice                 # shape (B,)
    return dice[0]                  # scalar


def _dice_ref(predicts, targets, *, smooth=1e-07, thresh=0.5, sample_wise=False):
    """Pure-JAX reference matching the PyTorch module."""
    if sample_wise:
        p = predicts.reshape(predicts.shape[0], -1)
        t = targets.reshape(targets.shape[0], -1)
        p = jnp.where(p >= thresh, 1.0, 0.0)
        t = jnp.where(t >= thresh, 1.0, 0.0)
        num = 2.0 * jnp.sum(p * t, axis=1)
        den = jnp.sum(p, axis=1) + jnp.sum(t, axis=1)
        return num / (den + smooth)
    p = jnp.where(predicts.reshape(-1) >= thresh, 1.0, 0.0)
    t = jnp.where(targets.reshape(-1) >= thresh, 1.0, 0.0)
    num = 2.0 * jnp.sum(p * t)
    den = jnp.sum(p) + jnp.sum(t)
    return num / (den + smooth)


if __name__ == "__main__":
    key = jax.random.PRNGKey(0)
    kp, kt = jax.random.split(key)
    # NCHW: batch=2, channels=4, spatial=16x16
    predicts = jax.random.uniform(kp, (2, 4, 16, 16), dtype=jnp.float32)
    targets = (jax.random.uniform(kt, (2, 4, 16, 16), dtype=jnp.float32) > 0.5).astype(
        jnp.float32
    )

    # global (sample_wise=False) mode
    d_global = jax.block_until_ready(dice_coeff(predicts, targets, sample_wise=False))
    r_global = _dice_ref(predicts, targets, sample_wise=False)

    # per-sample (sample_wise=True) mode
    d_sample = jax.block_until_ready(dice_coeff(predicts, targets, sample_wise=True))
    r_sample = _dice_ref(predicts, targets, sample_wise=True)

    assert jnp.allclose(d_global, r_global, rtol=1e-5, atol=1e-6), (d_global, r_global)
    assert jnp.allclose(d_sample, r_sample, rtol=1e-5, atol=1e-6), (d_sample, r_sample)

    # bf16 predictions exercise the dtype-aware (r=16) sublane packing path.
    d_bf16 = jax.block_until_ready(
        dice_coeff(predicts.astype(jnp.bfloat16), targets, sample_wise=True))
    r_bf16 = _dice_ref(predicts.astype(jnp.bfloat16), targets, sample_wise=True)
    assert jnp.allclose(d_bf16, r_bf16, rtol=1e-5, atol=1e-6), (d_bf16, r_bf16)

    print("KERNEL_OK")
</pallas_src>

<mosaic_0001>
module attributes {stable_mosaic.version = 11 : i64} {
  func.func @_dice_kernel(%arg0: i32, %arg1: i32, %arg2: i32, %arg3: memref<1x8x256xf32, #tpu.memory_space<vmem>>, %arg4: memref<1x8x256xf32, #tpu.memory_space<vmem>>, %arg5: memref<1x1x1x1xf32, #tpu.memory_space<vmem>>, %arg6: memref<1x1x1x1xf32, #tpu.memory_space<vmem>>, %arg7: memref<1x1xf32, #tpu.memory_space<vmem>>, %arg8: memref<1x1xf32, #tpu.memory_space<vmem>>) attributes {dimension_semantics = [#tpu.dimension_semantics<parallel>, #tpu.dimension_semantics<parallel>, #tpu.dimension_semantics<arbitrary>], iteration_bounds = array<i64: 1, 1, 1>, scalar_prefetch = 0 : i64, scratch_operands = 2 : i64, tpu.core_type = #tpu.core_type<tc>, window_params = [{transform_indices = @transform_0, window_bounds = array<i64: 1, 8, 256>}, {transform_indices = @transform_1, window_bounds = array<i64: 1, 8, 256>}, {transform_indices = @transform_2, window_bounds = array<i64: 1, 1, 1, 1>}, {transform_indices = @transform_3, window_bounds = array<i64: 1, 1, 1, 1>}]} {
    %c0_i32 = arith.constant 0 : i32
    %0 = arith.cmpi eq, %arg2, %c0_i32 : i32
    %1 = arith.extui %0 : i1 to i32
    %c0_i32_0 = arith.constant 0 : i32
    %2 = arith.cmpi ne, %1, %c0_i32_0 : i32
    scf.if %2 {
      %cst_19 = arith.constant 0.000000e+00 : f32
      %34 = vector.broadcast %cst_19 : f32 to vector<1x1xf32>
      %c0_20 = arith.constant 0 : index
      %c0_21 = arith.constant 0 : index
      %35 = vector.load %arg7[%c0_20, %c0_21] : memref<1x1xf32, #tpu.memory_space<vmem>>, vector<1x1xf32>
      tpu.vector_store %arg7[%c0_20, %c0_21], %34 {strides = array<i32>} : memref<1x1xf32, #tpu.memory_space<vmem>>, vector<1x1xf32>,
      %cst_22 = arith.constant 0.000000e+00 : f32
      %36 = vector.broadcast %cst_22 : f32 to vector<1x1xf32>
      %c0_23 = arith.constant 0 : index
      %c0_24 = arith.constant 0 : index
      %37 = vector.load %arg8[%c0_23, %c0_24] : memref<1x1xf32, #tpu.memory_space<vmem>>, vector<1x1xf32>
      tpu.vector_store %arg8[%c0_23, %c0_24], %36 {strides = array<i32>} : memref<1x1xf32, #tpu.memory_space<vmem>>, vector<1x1xf32>,
    } else {
    }
    %c0 = arith.constant 0 : index
    %c0_1 = arith.constant 0 : index
    %c0_2 = arith.constant 0 : index
    %3 = vector.load %arg3[%c0, %c0_1, %c0_2] : memref<1x8x256xf32, #tpu.memory_space<vmem>>, vector<1x8x256xf32>
    %cst = arith.constant 5.000000e-01 : f32
    %4 = vector.broadcast %cst : f32 to vector<1x8x256xf32>
    %5 = arith.cmpf oge, %3, %4 : vector<1x8x256xf32>
    %c0_3 = arith.constant 0 : index
    %c0_4 = arith.constant 0 : index
    %c0_5 = arith.constant 0 : index
    %6 = vector.load %arg4[%c0_3, %c0_4, %c0_5] : memref<1x8x256xf32, #tpu.memory_space<vmem>>, vector<1x8x256xf32>
    %cst_6 = arith.constant 5.000000e-01 : f32
    %7 = vector.broadcast %cst_6 : f32 to vector<1x8x256xf32>
    %8 = arith.cmpf oge, %6, %7 : vector<1x8x256xf32>
    %9 = arith.extui %5 : vector<1x8x256xi1> to vector<1x8x256xi32>
    %10 = arith.sitofp %9 : vector<1x8x256xi32> to vector<1x8x256xf32>
    %11 = arith.extui %8 : vector<1x8x256xi1> to vector<1x8x256xi32>
    %12 = arith.sitofp %11 : vector<1x8x256xi32> to vector<1x8x256xf32>
    %c0_7 = arith.constant 0 : index
    %c0_8 = arith.constant 0 : index
    %13 = vector.load %arg7[%c0_7, %c0_8] : memref<1x1xf32, #tpu.memory_space<vmem>>, vector<1x1xf32>
    %14 = arith.mulf %10, %12 : vector<1x8x256xf32>
    %15 = vector.shape_cast %14 : vector<1x8x256xf32> to vector<1x1x8x256xf32>
    %cst_9 = arith.constant dense<0.000000e+00> : vector<1xf32>
    %16 = vector.multi_reduction <add>, %15, %cst_9 [1, 2, 3] : vector<1x1x8x256xf32> to vector<1xf32>
    %17 = vector.shape_cast %16 : vector<1xf32> to vector<1x1x1x1xf32>
    %18 = vector.extract %17[0, 0, 0, 0] : f32 from vector<1x1x1x1xf32>
    %19 = vector.broadcast %18 : f32 to vector<1x1xf32>
    %20 = arith.addf %13, %19 : vector<1x1xf32>
    %c0_10 = arith.constant 0 : index
    %c0_11 = arith.constant 0 : index
    %21 = vector.load %arg7[%c0_10, %c0_11] : memref<1x1xf32, #tpu.memory_space<vmem>>, vector<1x1xf32>
    tpu.vector_store %arg7[%c0_10, %c0_11], %20 {strides = array<i32>} : memref<1x1xf32, #tpu.memory_space<vmem>>, vector<1x1xf32>,
    %c0_12 = arith.constant 0 : index
    %c0_13 = arith.constant 0 : index
    %22 = vector.load %arg8[%c0_12, %c0_13] : memref<1x1xf32, #tpu.memory_space<vmem>>, vector<1x1xf32>
    %23 = arith.addf %10, %12 : vector<1x8x256xf32>
    %24 = vector.shape_cast %23 : vector<1x8x256xf32> to vector<1x1x8x256xf32>
    %cst_14 = arith.constant dense<0.000000e+00> : vector<1xf32>
    %25 = vector.multi_reduction <add>, %24, %cst_14 [1, 2, 3] : vector<1x1x8x256xf32> to vector<1xf32>
    %26 = vector.shape_cast %25 : vector<1xf32> to vector<1x1x1x1xf32>
    %27 = vector.extract %26[0, 0, 0, 0] : f32 from vector<1x1x1x1xf32>
    %28 = vector.broadcast %27 : f32 to vector<1x1xf32>
    %29 = arith.addf %22, %28 : vector<1x1xf32>
    %c0_15 = arith.constant 0 : index
    %c0_16 = arith.constant 0 : index
    %30 = vector.load %arg8[%c0_15, %c0_16] : memref<1x1xf32, #tpu.memory_space<vmem>>, vector<1x1xf32>
    tpu.vector_store %arg8[%c0_15, %c0_16], %29 {strides = array<i32>} : memref<1x1xf32, #tpu.memory_space<vmem>>, vector<1x1xf32>,
    %c0_i32_17 = arith.constant 0 : i32
    %31 = arith.cmpi eq, %arg2, %c0_i32_17 : i32
    %32 = arith.extui %31 : i1 to i32
    %c0_i32_18 = arith.constant 0 : i32
    %33 = arith.cmpi ne, %32, %c0_i32_18 : i32
    scf.if %33 {
      %c0_19 = arith.constant 0 : index
      %c0_20 = arith.constant 0 : index
      %34 = vector.load %arg7[%c0_19, %c0_20] : memref<1x1xf32, #tpu.memory_space<vmem>>, vector<1x1xf32>
      %35 = vector.shape_cast %34 : vector<1x1xf32> to vector<1x1x1x1xf32>
      %c0_21 = arith.constant 0 : index
      %c0_22 = arith.constant 0 : index
      %c0_23 = arith.constant 0 : index
      %c0_24 = arith.constant 0 : index
      %36 = vector.load %arg5[%c0_21, %c0_22, %c0_23, %c0_24] : memref<1x1x1x1xf32, #tpu.memory_space<vmem>>, vector<1x1x1x1xf32>
      tpu.vector_store %arg5[%c0_21, %c0_22, %c0_23, %c0_24], %35 {strides = array<i32>} : memref<1x1x1x1xf32, #tpu.memory_space<vmem>>, vector<1x1x1x1xf32>,
      %c0_25 = arith.constant 0 : index
      %c0_26 = arith.constant 0 : index
      %37 = vector.load %arg8[%c0_25, %c0_26] : memref<1x1xf32, #tpu.memory_space<vmem>>, vector<1x1xf32>
      %38 = vector.shape_cast %37 : vector<1x1xf32> to vector<1x1x1x1xf32>
      %c0_27 = arith.constant 0 : index
      %c0_28 = arith.constant 0 : index
      %c0_29 = arith.constant 0 : index
      %c0_30 = arith.constant 0 : index
      %39 = vector.load %arg6[%c0_27, %c0_28, %c0_29, %c0_30] : memref<1x1x1x1xf32, #tpu.memory_space<vmem>>, vector<1x1x1x1xf32>
      tpu.vector_store %arg6[%c0_27, %c0_28, %c0_29, %c0_30], %38 {strides = array<i32>} : memref<1x1x1x1xf32, #tpu.memory_space<vmem>>, vector<1x1x1x1xf32>,
    } else {
    }
    return
  }
  func.func @transform_0(%arg0: i32, %arg1: i32, %arg2: i32) -> (i32, i32, i32) {
    %c1_i32 = arith.constant 1 : i32
    %0 = arith.muli %arg0, %c1_i32 : i32
    %1 = arith.addi %0, %arg2 : i32
    %c0_i32 = arith.constant 0 : i32
    %c0_i32_0 = arith.constant 0 : i32
    return %arg1, %c0_i32, %1 : i32, i32, i32
  }
  func.func @transform_1(%arg0: i32, %arg1: i32, %arg2: i32) -> (i32, i32, i32) {
    %c1_i32 = arith.constant 1 : i32
    %0 = arith.muli %arg0, %c1_i32 : i32
    %1 = arith.addi %0, %arg2 : i32
    %c0_i32 = arith.constant 0 : i32
    %c0_i32_0 = arith.constant 0 : i32
    return %arg1, %c0_i32, %1 : i32, i32, i32
  }
  func.func @transform_2(%arg0: i32, %arg1: i32, %arg2: i32) -> (i32, i32, i32, i32) {
    %c0_i32 = arith.constant 0 : i32
    %c0_i32_0 = arith.constant 0 : i32
    %c0_i32_1 = arith.constant 0 : i32
    return %arg0, %arg1, %c0_i32, %c0_i32_0 : i32, i32, i32, i32
  }
  func.func @transform_3(%arg0: i32, %arg1: i32, %arg2: i32) -> (i32, i32, i32, i32) {
    %c0_i32 = arith.constant 0 : i32
    %c0_i32_0 = arith.constant 0 : i32
    %c0_i32_1 = arith.constant 0 : i32
    return %arg0, %arg1, %c0_i32, %c0_i32_0 : i32, i32, i32, i32
  }
}

</mosaic_0001>

<bundles_post_ra>
// kernel: tpu_custom_call.1
= control target key start
LH: loop header
LB: loop body
LE: loop exit
PB: predicated region body
PF: predicated region fallthrough
CT: control target
= control target key end

     0   :  { %9 = vsyncpa [#allocation5], 0  ;;  %s332_s0 = inlined_call_operand.hbm [shape: f32[1,8,256], index: 0, kind: input, shape index: {}]   ;;  %s333_s1 = inlined_call_operand.hbm [shape: f32[1,8,256], index: 1, kind: input, shape index: {}]   ;;  %s334_s2 = inlined_call_operand.hbm [shape: f32[1,1,1,1], index: 2, kind: output, shape index: {0}]   ;;  %s335_s3 = inlined_call_operand.hbm [shape: f32[1,1,1,1], index: 3, kind: output, shape index: {1}]  }
   0x1   :  { %10 = vsyncpa [#allocation8], 0 }
   0x2   :  { %11 = vsyncpa [#allocation6], 0 }
   0x3   :  { %12 = vsyncpa [#allocation11], 0  ;;  %s253_s12 = smov [#allocation4]   ;;  %s254_s14 = smov [#allocation7]  }
   0x4   :  { %s23_s13 = sshll.u32 %s253_s12, 4  ;;  %s37_s15 = sshll.u32 %s254_s14, 4  ;;  %s24_s13 = int_to_ptr.vmem [resolvable:$true] %s23_s13  ;;  %s38_s15 = int_to_ptr.vmem [resolvable:$true] %s37_s15 }
   0x5   :  { %s157_s18 = scalar_lea.hbm %s332_s0, 256 }
   0x6   :  { %p158_p0 = scmp.ne.s32.totalorder %s332_s0, %s157_s18  ;;  %p161_p1 = scmp.lt.u32.totalorder %s157_s18, %s332_s0 }
   0x8   :  { %p163_p2 = pnand %p161_p1, %p158_p0 }
   0xa   :  { %166 = shalt.err (!%p163_p2)
}
   0xb   :  { %s167_s23 = scalar_lea.vmem %s24_s13, 256  ;;  %p172_p4 = scmp.lt.s32.totalorder %s24_s13, %s24_s13 }
   0xc   :  { %p168_p3 = scmp.ne.s32.totalorder %s24_s13, %s167_s23  ;;  %p173_p5 = scmp.lt.s32.totalorder %s167_s23, %s167_s23 }
   0xe   :  { %p174_p6 = por %p173_p5, %p172_p4 }
  0x10   :  { %p175_p7 = pnand %p174_p6, %p168_p3 }
  0x12   :  { %178 = shalt.err (!%p175_p7)
}
  0x13   :  { %26 = dma.hbm_to_vmem [thread:$0]  %s332_s0, 256, %s24_s13, [#allocation5]  }
  0x14   :  { %s179_s28 = scalar_lea.hbm %s333_s1, 256 }
  0x15   :  { %p180_p8 = scmp.ne.s32.totalorder %s333_s1, %s179_s28  ;;  %p183_p9 = scmp.lt.u32.totalorder %s179_s28, %s333_s1 }
  0x17   :  { %p185_p10 = pnand %p183_p9, %p180_p8 }
  0x19   :  { %188 = shalt.err (!%p185_p10)
}
  0x1a   :  { %s189_s6 = scalar_lea.vmem %s38_s15, 256  ;;  %p194_p12 = scmp.lt.s32.totalorder %s38_s15, %s38_s15 }
  0x1b   :  { %p190_p11 = scmp.ne.s32.totalorder %s38_s15, %s189_s6  ;;  %p195_p13 = scmp.lt.s32.totalorder %s189_s6, %s189_s6 }
  0x1d   :  { %p196_p0 = por %p195_p13, %p194_p12 }
  0x1f   :  { %p197_p1 = pnand %p196_p0, %p190_p11 }
  0x21   :  { %200 = shalt.err (!%p197_p1)
}
  0x22   :  { %40 = dma.hbm_to_vmem [thread:$0]  %s333_s1, 256, %s38_s15, [#allocation8]  }
  0x23   :  { %245 = dma.done.wait [#allocation5], 256  }
  0x24   :  { %246 = vsyncadd [#allocation5], 4294967040 }
  0x25   :  { %247 = dma.done.wait [#allocation8], 256  }
  0x26   :  { %248 = vsyncadd [#allocation8], 4294967040  ;;  %v58_v0 = vld [vmem:[#allocation4] sm:$0xff]  ;;  %v59_v1 = vld [vmem:[#allocation4 + $0x8] sm:$0xff]  ;;  %v255_v4 = vmov 0.0   ;;  %vm55_vm4 = vcmask 0  }
  0x27   :  { %v62_v2 = vld [vmem:[#allocation7] sm:$0xff]  ;;  %vm60_vm0 = vcmp.ge.f32.partialorder %v58_v0, 0.5  ;;  %vm61_vm1 = vcmp.ge.f32.partialorder %v59_v1, 0.5  ;;  %v63_v3 = vld [vmem:[#allocation7 + $0x8] sm:$0xff]  ;;  %56 = vst.msk [vmem:[#allocation2] sm:$0x1] %vm55_vm4, %v255_v4 }
  0x28   :  { %vm64_vm2 = vcmp.ge.f32.partialorder %v62_v2, 0.5  ;;  %vm65_vm3 = vcmp.ge.f32.partialorder %v63_v3, 0.5  ;;  %v144_v5 = vsel %vm60_vm0, 1.0, %v255_v4  ;;  %v145_v6 = vsel %vm61_vm1, 1.0, %v255_v4  ;;  %57 = vst.msk [vmem:[#allocation3] sm:$0x1] %vm55_vm4, %v255_v4 }
  0x29   :  { %v146_v7 = vsel %vm64_vm2, 1.0, %v255_v4  ;;  %v147_v8 = vsel %vm65_vm3, 1.0, %v255_v4  ;;  %s256_s9 = smov [#allocation9]   ;;  %s257_s11 = smov [#allocation10]  }
  0x2a   :  { %v75_v9 = vmul.f32 %v146_v7, %v144_v5  ;;  %v76_v10 = vmul.f32 %v147_v8, %v145_v6  ;;  %v92_v11 = vadd.f32 %v146_v7, %v144_v5  ;;  %v93_v12 = vadd.f32 %v147_v8, %v145_v6  ;;  %s120_s10 = sshll.u32 %s256_s9, 4  ;;  %s130_s12 = sshll.u32 %s257_s11, 4  ;;  %s121_s10 = int_to_ptr.vmem [resolvable:$true] %s120_s10  ;;  %s131_s12 = int_to_ptr.vmem [resolvable:$true] %s130_s12 }
  0x2b   :  { %s201_s13 = scalar_lea.vmem %s121_s10, 16  ;;  %s205_s14 = scalar_lea.vmem %s121_s10, 32 }
  0x2c   :  { %v77_v13 = vadd.f32 %v76_v10, %v75_v9  ;;  %v94_v14 = vadd.f32 %v93_v12, %v92_v11  ;;  %p202_p2 = scmp.ne.s32.totalorder %s121_s10, %s201_s13  ;;  %p206_p3 = scmp.lt.s32.totalorder %s121_s10, %s121_s10 }
  0x2d   :  { %p207_p4 = scmp.lt.s32.totalorder %s205_s14, %s201_s13 }
  0x2e   :  { %78 = vadd.xlane.f32.xlu0 %v77_v13  ;;  %v74_v29 = vld [vmem:[#allocation2] sm:$0x1] }
  0x2f   :  { %v91_v32 = vld [vmem:[#allocation3] sm:$0x1]  ;;  %p208_p5 = por %p207_p4, %p206_p3 }
  0x31   :  { %p209_p6 = pnand %p208_p5, %p202_p2 }
  0x32   :  { %95 = vadd.xlane.f32.xlu0 %v94_v14 }
  0xbb   :  { %v79_v15 = vpop.xlane.xlu0 %78 }
  0xbc   :  { %v80_v16 = vrot.slane %v79_v15, 4 }
  0xbe   :  { %v81_v17 = vadd.f32 %v80_v16, %v79_v15 }
  0xbf   :  { %v96_v18 = vpop.xlane.xlu0 %95 }
  0xc0   :  { %v82_v19 = vrot.slane %v81_v17, 2  ;;  %v97_v20 = vrot.slane %v96_v18, 4 }
  0xc2   :  { %v98_v21 = vadd.f32 %v97_v20, %v96_v18  ;;  %v83_v22 = vadd.f32 %v82_v19, %v81_v17 }
  0xc4   :  { %v99_v23 = vrot.slane %v98_v21, 2  ;;  %v84_v24 = vrot.slane %v83_v22, 1 }
  0xc6   :  { %v100_v25 = vadd.f32 %v99_v23, %v98_v21  ;;  %v85_v26 = vadd.f32 %v84_v24, %v83_v22 }
  0xc8   :  { %148 = vpush %v85_v26  ;;  %v101_v27 = vrot.slane %v100_v25, 1 }
  0xca   :  { %v102_v28 = vadd.f32 %v101_v27, %v100_v25 }
  0xcc   :  { %150 = vpush %v102_v28 }
  0xf9   :  { %s149_s1 = spop %148 }
  0xfa   :  { %v87_v30 = vstv %s149_s1 }
  0xfb   :  { %v88_v31 = vadd.f32 %v87_v30, %v74_v29 }
  0xfd   :  { %90 = vst.msk [vmem:[#allocation2] sm:$0x1] %vm55_vm4, %v88_v31  ;;  %s151_s8 = spop %150 }
  0xfe   :  { %v104_v33 = vstv %s151_s8 }
  0xff   :  { %v105_v34 = vadd.f32 %v104_v33, %v91_v32 }
 0x101   :  { %106 = vst.msk [vmem:[#allocation3] sm:$0x1] %vm55_vm4, %v105_v34 }
 0x104   :  { %v110_v35 = vld [vmem:[#allocation2] sm:$0x1] }
 0x105   :  { %111 = vst.msk [vmem:[#allocation9] sm:$0x1] %vm55_vm4, %v110_v35 }
 0x106   :  { %212 = shalt.err (!%p209_p6)
}
 0x107   :  { %s213_s17 = scalar_lea.hbm %s334_s2, 16 }
 0x108   :  { %p214_p7 = scmp.ne.s32.totalorder %s334_s2, %s213_s17  ;;  %p217_p8 = scmp.lt.u32.totalorder %s213_s17, %s334_s2 }
 0x10a   :  { %p219_p9 = pnand %p217_p8, %p214_p7 }
 0x10c   :  { %222 = shalt.err (!%p219_p9)
}
 0x10d   :  { %123 = dma.vmem_to_hbm [thread:$0]  %s121_s10, 16, %s334_s2, [#allocation6]   ;;  %v112_v36 = vld [vmem:[#allocation3] sm:$0x1] }
 0x10e   :  { %113 = vst.msk [vmem:[#allocation10] sm:$0x1] %vm55_vm4, %v112_v36  ;;  %s223_s24 = scalar_lea.vmem %s131_s12, 16  ;;  %s227_s25 = scalar_lea.vmem %s131_s12, 32 }
 0x10f   :  { %p224_p10 = scmp.ne.s32.totalorder %s131_s12, %s223_s24  ;;  %p228_p11 = scmp.lt.s32.totalorder %s131_s12, %s131_s12 }
 0x110   :  { %p229_p12 = scmp.lt.s32.totalorder %s227_s25, %s223_s24 }
 0x112   :  { %p230_p13 = por %p229_p12, %p228_p11 }
 0x114   :  { %p231_p0 = pnand %p230_p13, %p224_p10 }
 0x116   :  { %234 = shalt.err (!%p231_p0)
}
 0x117   :  { %s235_s28 = scalar_lea.hbm %s335_s3, 16 }
 0x118   :  { %p236_p1 = scmp.ne.s32.totalorder %s335_s3, %s235_s28  ;;  %p239_p2 = scmp.lt.u32.totalorder %s235_s28, %s335_s3 }
 0x11a   :  { %p241_p3 = pnand %p239_p2, %p236_p1 }
 0x11c   :  { %244 = shalt.err (!%p241_p3)
}
 0x11d   :  { %133 = dma.vmem_to_hbm [thread:$0]  %s131_s12, 16, %s335_s3, [#allocation11]  }
 0x11e   :  { %249 = dma.done.wait [#allocation6], 16  }
 0x11f   :  { %250 = vsyncadd [#allocation6], 4294967280 }
 0x120   :  { %251 = dma.done.wait [#allocation11], 16  }
 0x121   :  { %252 = vsyncadd [#allocation11], 4294967280 }
 0x122   :  { %140 = vsyncpa [#allocation5], 1 }
 0x123   :  { %141 = vsyncpa [#allocation8], 1 }
 0x124   :  { %142 = vsyncpa [#allocation6], 1 }
 0x125   :  { %143 = vsyncpa [#allocation11], 1 }

</bundles_post_ra>
